<compile_context>
chip_gen: v5e
topology: v5e:2x2
jax: 0.10.0
libtpu: 0.0.40
codegen_flags: <defaults>
</compile_context>

<pallas_src>
import functools

import jax
import jax.numpy as jnp
import numpy as np
from jax.experimental import pallas as pl
from jax.experimental.pallas import tpu as pltpu


def _residual_block_kernel(x_ref, w1_ref, b1_ref, w2_ref, b2_ref, out_ref, *,
                           K, p, L):
    """One block of `bb` batch elements, channels on sublanes, length on lanes.

    x_ref  : (bb, Cin, L + 4p)   input, zero-padded by 2p on both ends of L
    w1_ref : (K, Cout, Cin)      conv1 weights, tap-major
    b1_ref : (Cout, 1)           f32
    w2_ref : (K, Cout, Cout)     conv2 weights, tap-major
    b2_ref : (Cout, 1)           f32
    out_ref: (bb, Cout, L)       f32
    """
    bb = x_ref.shape[0]
    Lp = L + 2 * p

    # Lane mask for conv1's extended (L + 2p)-column output: only columns
    # [p, p + L) hold real conv1 outputs; the rest must be zero so conv2 sees
    # true zero padding.  Computed in-kernel -- no HBM mask input.
    col = jax.lax.broadcasted_iota(jnp.int32, (1, Lp), 1)
    col_ok = jnp.logical_and(col >= p, col < p + L)

    for b in range(bb):
        xb = x_ref[b]                                     # (Cin, L + 4p)

        # ---- conv1, evaluated on L + 2p columns so conv2's taps are plain
        #      static lane slices (no scratch round trip / re-pad). ----
        acc1 = jnp.dot(w1_ref[0], xb[:, 0:Lp],
                       preferred_element_type=jnp.float32)
        for k in range(1, K):
            acc1 = acc1 + jnp.dot(w1_ref[k], xb[:, k:k + Lp],
                                  preferred_element_type=jnp.float32)
        # bias + ReLU + zero the p padding columns, one VPU pass.
        h = jnp.where(col_ok, jnp.maximum(acc1 + b1_ref[...], 0.0), 0.0)
        h = h.astype(w2_ref.dtype)

        # ---- conv2 (tap k reads lane-shifted view of h) ----
        acc2 = jnp.dot(w2_ref[0], h[:, 0:L],
                       preferred_element_type=jnp.float32)
        for k in range(1, K):
            acc2 = acc2 + jnp.dot(w2_ref[k], h[:, k:k + L],
                                  preferred_element_type=jnp.float32)

        # ---- residual add + ReLU ----
        identity = xb[:, 2 * p:2 * p + L].astype(jnp.float32)
        out_ref[b] = jnp.maximum(acc2 + b2_ref[...] + identity,
                                 0.0).astype(out_ref.dtype)


def _cdiv(a, b):
    return -(-a // b)


def _ceil_to(n, m):
    return _cdiv(n, m) * m


def _vmem_limit_bytes(bb, cin, cout, K, L, p, itemsize):
    """Rough (tile-padded) VMEM need with double-buffering + headroom, clamped."""
    sub = 8 * (4 // itemsize)                      # 8 rows for f32, 16 for bf16
    x_blk = bb * _ceil_to(cin, sub) * _ceil_to(L + 4 * p, 128) * itemsize
    o_blk = bb * _ceil_to(cout, 8) * _ceil_to(L, 128) * 4
    w_blk = K * _ceil_to(cout, sub) * (_ceil_to(cin, 128) + _ceil_to(cout, 128)) * itemsize
    b_blk = 2 * 8 * 128 * 4
    tmp = 4 * _ceil_to(cout, 8) * _ceil_to(L + 2 * p, 128) * 4   # in-kernel temporaries
    est = 2 * (2 * (x_blk + o_blk) + w_blk + b_blk) + tmp + (4 << 20)
    return int(min(max(est, 16 << 20), 48 << 20))


def residual_block(x_ncl, w1, b1, w2, b2, padding, *,
                   operand_dtype=jnp.float32, target_lanes=512):
    """x_ncl: (N, Cin, L). w1: (Cout, Cin, K), w2: (Cout, Cout, K). Returns (N, Cout, L).

    Set operand_dtype=jnp.bfloat16 on v6e/v7x for ~2-3x MXU throughput (accumulation
    stays f32); keep f32 when tight (1e-4) accuracy is required.
    """
    N, Cin, L = x_ncl.shape
    Cout, Cin_w, K = w1.shape
    if Cin_w != Cin or Cout != Cin:
        raise ValueError("residual add requires in_channels == out_channels")
    p = padding
    if p != (K - 1) // 2:
        raise ValueError("residual add requires 'same' padding: padding == (K-1)//2")

    Lp = L + 2 * p
    L4p = L + 4 * p

    # Batch elements per grid step: enough work to amortize the ~0.35us per-step
    # overhead, but capped at ceil(N/2) so G >= 2 (both TensorCores on v7x).
    bb = max(1, min(_cdiv(N, 2), _cdiv(target_lanes, Lp)))
    G = _cdiv(N, bb)
    Npad = G * bb

    # ---- host-side prep: ONE pad pass, no gather, no transposes ----
    x_prep = jnp.pad(x_ncl.astype(operand_dtype),
                     ((0, Npad - N), (0, 0), (2 * p, 2 * p)))      # (Npad, Cin, L+4p)

    w1_k = jnp.transpose(w1, (2, 0, 1)).astype(operand_dtype)      # (K, Cout, Cin)
    w2_k = jnp.transpose(w2, (2, 0, 1)).astype(operand_dtype)      # (K, Cout, Cout)
    b1_r = b1.reshape(Cout, 1).astype(jnp.float32)
    b2_r = b2.reshape(Cout, 1).astype(jnp.float32)

    kernel = functools.partial(_residual_block_kernel, K=K, p=p, L=L)

    itemsize = jnp.dtype(operand_dtype).itemsize
    vmem_limit = _vmem_limit_bytes(bb, Cin, Cout, K, L, p, itemsize)

    out = pl.pallas_call(
        kernel,
        out_shape=jax.ShapeDtypeStruct((Npad, Cout, L), jnp.float32),
        grid_spec=pltpu.PrefetchScalarGridSpec(
            num_scalar_prefetch=0,
            grid=(G,),
            in_specs=[
                pl.BlockSpec((bb, Cin, L4p), lambda g: (g, 0, 0)),
                pl.BlockSpec((K, Cout, Cin), lambda g: (0, 0, 0)),
                pl.BlockSpec((Cout, 1), lambda g: (0, 0)),
                pl.BlockSpec((K, Cout, Cout), lambda g: (0, 0, 0)),
                pl.BlockSpec((Cout, 1), lambda g: (0, 0)),
            ],
            out_specs=pl.BlockSpec((bb, Cout, L), lambda g: (g, 0, 0)),
        ),
        compiler_params=pltpu.CompilerParams(
            dimension_semantics=("parallel",),
            vmem_limit_bytes=vmem_limit),
    )(x_prep, w1_k, b1_r, w2_k, b2_r)

    return out[:N]                                                  # already (N, Cout, L)


def _reference(x_ncl, w1, b1, w2, b2, padding):
    """Plain-JAX reference matching PyTorch Conv1d semantics (NCL)."""
    dn = ("NCH", "OIH", "NCH")
    conv = lambda x, w: jax.lax.conv_general_dilated(
        x, w, window_strides=(1,), padding=[(padding, padding)],
        dimension_numbers=dn)
    out = conv(x_ncl, w1) + b1[None, :, None]
    out = jnp.maximum(out, 0.0)
    out = conv(out, w2) + b2[None, :, None]
    out = out + x_ncl
    return jnp.maximum(out, 0.0)


if __name__ == "__main__":
    # Residual add requires in_channels == out_channels and "same" padding.
    # N=3 (with bb=2, G=2) exercises multi-block execution AND the Npad > N
    # zero-padded-batch path flagged in the review.
    N, C, L, K = 3, 4, 16, 3
    padding = (K - 1) // 2

    key = jax.random.PRNGKey(0)
    kx, k1w, k1b, k2w, k2b = jax.random.split(key, 5)

    x = jax.random.normal(kx, (N, C, L), jnp.float32)

    # Deterministic init mimicking PyTorch Conv1d default (uniform +/- 1/sqrt(fan_in))
    fan_in = C * K
    bound = 1.0 / np.sqrt(fan_in)
    w1 = jax.random.uniform(k1w, (C, C, K), jnp.float32, -bound, bound)
    b1 = jax.random.uniform(k1b, (C,), jnp.float32, -bound, bound)
    w2 = jax.random.uniform(k2w, (C, C, K), jnp.float32, -bound, bound)
    b2 = jax.random.uniform(k2b, (C,), jnp.float32, -bound, bound)

    out = jax.block_until_ready(residual_block(x, w1, b1, w2, b2, padding))
    ref = jax.block_until_ready(_reference(x, w1, b1, w2, b2, padding))
    np.testing.assert_allclose(np.asarray(out), np.asarray(ref), atol=1e-4, rtol=1e-4)

    print("KERNEL_OK")
</pallas_src>

<mosaic_0001>
module attributes {stable_mosaic.version = 11 : i64} {
  func.func @_residual_block_kernel(%arg0: i32, %arg1: memref<2x4x20xf32, #tpu.memory_space<vmem>>, %arg2: memref<3x4x4xf32, #tpu.memory_space<vmem>>, %arg3: memref<4x1xf32, #tpu.memory_space<vmem>>, %arg4: memref<3x4x4xf32, #tpu.memory_space<vmem>>, %arg5: memref<4x1xf32, #tpu.memory_space<vmem>>, %arg6: memref<2x4x16xf32, #tpu.memory_space<vmem>>) attributes {dimension_semantics = [#tpu.dimension_semantics<parallel>], iteration_bounds = array<i64: 2>, scalar_prefetch = 0 : i64, scratch_operands = 0 : i64, tpu.core_type = #tpu.core_type<tc>, window_params = [{transform_indices = @transform_0, window_bounds = array<i64: 2, 4, 20>}, {pipeline_mode = #tpu.pipeline_mode<synchronous>, transform_indices = @transform_1, window_bounds = array<i64: 3, 4, 4>}, {pipeline_mode = #tpu.pipeline_mode<synchronous>, transform_indices = @transform_2, window_bounds = array<i64: 4, 1>}, {pipeline_mode = #tpu.pipeline_mode<synchronous>, transform_indices = @transform_3, window_bounds = array<i64: 3, 4, 4>}, {pipeline_mode = #tpu.pipeline_mode<synchronous>, transform_indices = @transform_4, window_bounds = array<i64: 4, 1>}, {transform_indices = @transform_5, window_bounds = array<i64: 2, 4, 16>}]} {
    %0 = tpu.iota {dimensions = array<i32: 1>} : vector<1x18xi32>
    %c1_i32 = arith.constant 1 : i32
    %1 = vector.broadcast %c1_i32 : i32 to vector<1x18xi32>
    %2 = arith.cmpi sge, %0, %1 : vector<1x18xi32>
    %c17_i32 = arith.constant 17 : i32
    %3 = vector.broadcast %c17_i32 : i32 to vector<1x18xi32>
    %4 = arith.cmpi slt, %0, %3 : vector<1x18xi32>
    %5 = arith.andi %2, %4 : vector<1x18xi1>
    %c0 = arith.constant 0 : index
    %c0_0 = arith.constant 0 : index
    %c0_1 = arith.constant 0 : index
    %6 = vector.load %arg1[%c0, %c0_0, %c0_1] : memref<2x4x20xf32, #tpu.memory_space<vmem>>, vector<1x4x20xf32>
    %7 = vector.shape_cast %6 : vector<1x4x20xf32> to vector<4x20xf32>
    %c0_2 = arith.constant 0 : index
    %c0_3 = arith.constant 0 : index
    %c0_4 = arith.constant 0 : index
    %8 = vector.load %arg2[%c0_2, %c0_3, %c0_4] : memref<3x4x4xf32, #tpu.memory_space<vmem>>, vector<1x4x4xf32>
    %9 = vector.shape_cast %8 : vector<1x4x4xf32> to vector<4x4xf32>
    %10 = vector.extract_strided_slice %7 {offsets = [0, 0], sizes = [4, 18], strides = [1, 1]} : vector<4x20xf32> to vector<4x18xf32>
    %cst = arith.constant dense<0.000000e+00> : vector<4x18xf32>
    %11 = tpu.matmul %9, %10, %cst {dimension_numbers = #tpu.dot_dimension_numbers<[1], [0], [0], [1], [0, 0, 1, 1], [], []>} : vector<4x4xf32>, vector<4x18xf32>, vector<4x18xf32> -> vector<4x18xf32>
    %c1 = arith.constant 1 : index
    %c0_5 = arith.constant 0 : index
    %c0_6 = arith.constant 0 : index
    %12 = vector.load %arg2[%c1, %c0_5, %c0_6] : memref<3x4x4xf32, #tpu.memory_space<vmem>>, vector<1x4x4xf32>
    %13 = vector.shape_cast %12 : vector<1x4x4xf32> to vector<4x4xf32>
    %14 = vector.extract_strided_slice %7 {offsets = [0, 1], sizes = [4, 18], strides = [1, 1]} : vector<4x20xf32> to vector<4x18xf32>
    %cst_7 = arith.constant dense<0.000000e+00> : vector<4x18xf32>
    %15 = tpu.matmul %13, %14, %cst_7 {dimension_numbers = #tpu.dot_dimension_numbers<[1], [0], [0], [1], [0, 0, 1, 1], [], []>} : vector<4x4xf32>, vector<4x18xf32>, vector<4x18xf32> -> vector<4x18xf32>
    %16 = arith.addf %11, %15 : vector<4x18xf32>
    %c2 = arith.constant 2 : index
    %c0_8 = arith.constant 0 : index
    %c0_9 = arith.constant 0 : index
    %17 = vector.load %arg2[%c2, %c0_8, %c0_9] : memref<3x4x4xf32, #tpu.memory_space<vmem>>, vector<1x4x4xf32>
    %18 = vector.shape_cast %17 : vector<1x4x4xf32> to vector<4x4xf32>
    %19 = vector.extract_strided_slice %7 {offsets = [0, 2], sizes = [4, 18], strides = [1, 1]} : vector<4x20xf32> to vector<4x18xf32>
    %cst_10 = arith.constant dense<0.000000e+00> : vector<4x18xf32>
    %20 = tpu.matmul %18, %19, %cst_10 {dimension_numbers = #tpu.dot_dimension_numbers<[1], [0], [0], [1], [0, 0, 1, 1], [], []>} : vector<4x4xf32>, vector<4x18xf32>, vector<4x18xf32> -> vector<4x18xf32>
    %21 = arith.addf %16, %20 : vector<4x18xf32>
    %c0_11 = arith.constant 0 : index
    %c0_12 = arith.constant 0 : index
    %22 = vector.load %arg3[%c0_11, %c0_12] : memref<4x1xf32, #tpu.memory_space<vmem>>, vector<4x1xf32>
    %23 = vector.broadcast %22 : vector<4x1xf32> to vector<4x18xf32>
    %24 = arith.addf %21, %23 : vector<4x18xf32>
    %cst_13 = arith.constant 0.000000e+00 : f32
    %25 = vector.broadcast %cst_13 : f32 to vector<4x18xf32>
    %26 = arith.maximumf %24, %25 : vector<4x18xf32>
    %cst_14 = arith.constant 0.000000e+00 : f32
    %27 = vector.shape_cast %5 : vector<1x18xi1> to vector<1x18xi1>
    %28 = vector.broadcast %27 : vector<1x18xi1> to vector<4x18xi1>
    %29 = vector.broadcast %cst_14 : f32 to vector<4x18xf32>
    %30 = arith.select %28, %26, %29 : vector<4x18xi1>, vector<4x18xf32>
    %c0_15 = arith.constant 0 : index
    %c0_16 = arith.constant 0 : index
    %c0_17 = arith.constant 0 : index
    %31 = vector.load %arg4[%c0_15, %c0_16, %c0_17] : memref<3x4x4xf32, #tpu.memory_space<vmem>>, vector<1x4x4xf32>
    %32 = vector.shape_cast %31 : vector<1x4x4xf32> to vector<4x4xf32>
    %33 = vector.extract_strided_slice %30 {offsets = [0, 0], sizes = [4, 16], strides = [1, 1]} : vector<4x18xf32> to vector<4x16xf32>
    %cst_18 = arith.constant dense<0.000000e+00> : vector<4x16xf32>
    %34 = tpu.matmul %32, %33, %cst_18 {dimension_numbers = #tpu.dot_dimension_numbers<[1], [0], [0], [1], [0, 0, 1, 1], [], []>} : vector<4x4xf32>, vector<4x16xf32>, vector<4x16xf32> -> vector<4x16xf32>
    %c1_19 = arith.constant 1 : index
    %c0_20 = arith.constant 0 : index
    %c0_21 = arith.constant 0 : index
    %35 = vector.load %arg4[%c1_19, %c0_20, %c0_21] : memref<3x4x4xf32, #tpu.memory_space<vmem>>, vector<1x4x4xf32>
    %36 = vector.shape_cast %35 : vector<1x4x4xf32> to vector<4x4xf32>
    %37 = vector.extract_strided_slice %30 {offsets = [0, 1], sizes = [4, 16], strides = [1, 1]} : vector<4x18xf32> to vector<4x16xf32>
    %cst_22 = arith.constant dense<0.000000e+00> : vector<4x16xf32>
    %38 = tpu.matmul %36, %37, %cst_22 {dimension_numbers = #tpu.dot_dimension_numbers<[1], [0], [0], [1], [0, 0, 1, 1], [], []>} : vector<4x4xf32>, vector<4x16xf32>, vector<4x16xf32> -> vector<4x16xf32>
    %39 = arith.addf %34, %38 : vector<4x16xf32>
    %c2_23 = arith.constant 2 : index
    %c0_24 = arith.constant 0 : index
    %c0_25 = arith.constant 0 : index
    %40 = vector.load %arg4[%c2_23, %c0_24, %c0_25] : memref<3x4x4xf32, #tpu.memory_space<vmem>>, vector<1x4x4xf32>
    %41 = vector.shape_cast %40 : vector<1x4x4xf32> to vector<4x4xf32>
    %42 = vector.extract_strided_slice %30 {offsets = [0, 2], sizes = [4, 16], strides = [1, 1]} : vector<4x18xf32> to vector<4x16xf32>
    %cst_26 = arith.constant dense<0.000000e+00> : vector<4x16xf32>
    %43 = tpu.matmul %41, %42, %cst_26 {dimension_numbers = #tpu.dot_dimension_numbers<[1], [0], [0], [1], [0, 0, 1, 1], [], []>} : vector<4x4xf32>, vector<4x16xf32>, vector<4x16xf32> -> vector<4x16xf32>
    %44 = arith.addf %39, %43 : vector<4x16xf32>
    %45 = vector.extract_strided_slice %7 {offsets = [0, 2], sizes = [4, 16], strides = [1, 1]} : vector<4x20xf32> to vector<4x16xf32>
    %c0_27 = arith.constant 0 : index
    %c0_28 = arith.constant 0 : index
    %46 = vector.load %arg5[%c0_27, %c0_28] : memref<4x1xf32, #tpu.memory_space<vmem>>, vector<4x1xf32>
    %47 = vector.broadcast %46 : vector<4x1xf32> to vector<4x16xf32>
    %48 = arith.addf %44, %47 : vector<4x16xf32>
    %49 = arith.addf %48, %45 : vector<4x16xf32>
    %cst_29 = arith.constant 0.000000e+00 : f32
    %50 = vector.broadcast %cst_29 : f32 to vector<4x16xf32>
    %51 = arith.maximumf %49, %50 : vector<4x16xf32>
    %c0_30 = arith.constant 0 : index
    %c0_31 = arith.constant 0 : index
    %c0_32 = arith.constant 0 : index
    %52 = vector.load %arg6[%c0_30, %c0_31, %c0_32] : memref<2x4x16xf32, #tpu.memory_space<vmem>>, vector<1x4x16xf32>
    %53 = vector.shape_cast %52 : vector<1x4x16xf32> to vector<4x16xf32>
    %54 = vector.shape_cast %51 : vector<4x16xf32> to vector<1x4x16xf32>
    tpu.vector_store %arg6[%c0_30, %c0_31, %c0_32], %54 {strides = array<i32>} : memref<2x4x16xf32, #tpu.memory_space<vmem>>, vector<1x4x16xf32>,
    %c1_33 = arith.constant 1 : index
    %c0_34 = arith.constant 0 : index
    %c0_35 = arith.constant 0 : index
    %55 = vector.load %arg1[%c1_33, %c0_34, %c0_35] : memref<2x4x20xf32, #tpu.memory_space<vmem>>, vector<1x4x20xf32>
    %56 = vector.shape_cast %55 : vector<1x4x20xf32> to vector<4x20xf32>
    %c0_36 = arith.constant 0 : index
    %c0_37 = arith.constant 0 : index
    %c0_38 = arith.constant 0 : index
    %57 = vector.load %arg2[%c0_36, %c0_37, %c0_38] : memref<3x4x4xf32, #tpu.memory_space<vmem>>, vector<1x4x4xf32>
    %58 = vector.shape_cast %57 : vector<1x4x4xf32> to vector<4x4xf32>
    %59 = vector.extract_strided_slice %56 {offsets = [0, 0], sizes = [4, 18], strides = [1, 1]} : vector<4x20xf32> to vector<4x18xf32>
    %cst_39 = arith.constant dense<0.000000e+00> : vector<4x18xf32>
    %60 = tpu.matmul %58, %59, %cst_39 {dimension_numbers = #tpu.dot_dimension_numbers<[1], [0], [0], [1], [0, 0, 1, 1], [], []>} : vector<4x4xf32>, vector<4x18xf32>, vector<4x18xf32> -> vector<4x18xf32>
    %c1_40 = arith.constant 1 : index
    %c0_41 = arith.constant 0 : index
    %c0_42 = arith.constant 0 : index
    %61 = vector.load %arg2[%c1_40, %c0_41, %c0_42] : memref<3x4x4xf32, #tpu.memory_space<vmem>>, vector<1x4x4xf32>
    %62 = vector.shape_cast %61 : vector<1x4x4xf32> to vector<4x4xf32>
    %63 = vector.extract_strided_slice %56 {offsets = [0, 1], sizes = [4, 18], strides = [1, 1]} : vector<4x20xf32> to vector<4x18xf32>
    %cst_43 = arith.constant dense<0.000000e+00> : vector<4x18xf32>
    %64 = tpu.matmul %62, %63, %cst_43 {dimension_numbers = #tpu.dot_dimension_numbers<[1], [0], [0], [1], [0, 0, 1, 1], [], []>} : vector<4x4xf32>, vector<4x18xf32>, vector<4x18xf32> -> vector<4x18xf32>
    %65 = arith.addf %60, %64 : vector<4x18xf32>
    %c2_44 = arith.constant 2 : index
    %c0_45 = arith.constant 0 : index
    %c0_46 = arith.constant 0 : index
    %66 = vector.load %arg2[%c2_44, %c0_45, %c0_46] : memref<3x4x4xf32, #tpu.memory_space<vmem>>, vector<1x4x4xf32>
    %67 = vector.shape_cast %66 : vector<1x4x4xf32> to vector<4x4xf32>
    %68 = vector.extract_strided_slice %56 {offsets = [0, 2], sizes = [4, 18], strides = [1, 1]} : vector<4x20xf32> to vector<4x18xf32>
    %cst_47 = arith.constant dense<0.000000e+00> : vector<4x18xf32>
    %69 = tpu.matmul %67, %68, %cst_47 {dimension_numbers = #tpu.dot_dimension_numbers<[1], [0], [0], [1], [0, 0, 1, 1], [], []>} : vector<4x4xf32>, vector<4x18xf32>, vector<4x18xf32> -> vector<4x18xf32>
    %70 = arith.addf %65, %69 : vector<4x18xf32>
    %c0_48 = arith.constant 0 : index
    %c0_49 = arith.constant 0 : index
    %71 = vector.load %arg3[%c0_48, %c0_49] : memref<4x1xf32, #tpu.memory_space<vmem>>, vector<4x1xf32>
    %72 = vector.broadcast %71 : vector<4x1xf32> to vector<4x18xf32>
    %73 = arith.addf %70, %72 : vector<4x18xf32>
    %cst_50 = arith.constant 0.000000e+00 : f32
    %74 = vector.broadcast %cst_50 : f32 to vector<4x18xf32>
    %75 = arith.maximumf %73, %74 : vector<4x18xf32>
    %cst_51 = arith.constant 0.000000e+00 : f32
    %76 = vector.shape_cast %5 : vector<1x18xi1> to vector<1x18xi1>
    %77 = vector.broadcast %76 : vector<1x18xi1> to vector<4x18xi1>
    %78 = vector.broadcast %cst_51 : f32 to vector<4x18xf32>
    %79 = arith.select %77, %75, %78 : vector<4x18xi1>, vector<4x18xf32>
    %c0_52 = arith.constant 0 : index
    %c0_53 = arith.constant 0 : index
    %c0_54 = arith.constant 0 : index
    %80 = vector.load %arg4[%c0_52, %c0_53, %c0_54] : memref<3x4x4xf32, #tpu.memory_space<vmem>>, vector<1x4x4xf32>
    %81 = vector.shape_cast %80 : vector<1x4x4xf32> to vector<4x4xf32>
    %82 = vector.extract_strided_slice %79 {offsets = [0, 0], sizes = [4, 16], strides = [1, 1]} : vector<4x18xf32> to vector<4x16xf32>
    %cst_55 = arith.constant dense<0.000000e+00> : vector<4x16xf32>
    %83 = tpu.matmul %81, %82, %cst_55 {dimension_numbers = #tpu.dot_dimension_numbers<[1], [0], [0], [1], [0, 0, 1, 1], [], []>} : vector<4x4xf32>, vector<4x16xf32>, vector<4x16xf32> -> vector<4x16xf32>
    %c1_56 = arith.constant 1 : index
    %c0_57 = arith.constant 0 : index
    %c0_58 = arith.constant 0 : index
    %84 = vector.load %arg4[%c1_56, %c0_57, %c0_58] : memref<3x4x4xf32, #tpu.memory_space<vmem>>, vector<1x4x4xf32>
    %85 = vector.shape_cast %84 : vector<1x4x4xf32> to vector<4x4xf32>
    %86 = vector.extract_strided_slice %79 {offsets = [0, 1], sizes = [4, 16], strides = [1, 1]} : vector<4x18xf32> to vector<4x16xf32>
    %cst_59 = arith.constant dense<0.000000e+00> : vector<4x16xf32>
    %87 = tpu.matmul %85, %86, %cst_59 {dimension_numbers = #tpu.dot_dimension_numbers<[1], [0], [0], [1], [0, 0, 1, 1], [], []>} : vector<4x4xf32>, vector<4x16xf32>, vector<4x16xf32> -> vector<4x16xf32>
    %88 = arith.addf %83, %87 : vector<4x16xf32>
    %c2_60 = arith.constant 2 : index
    %c0_61 = arith.constant 0 : index
    %c0_62 = arith.constant 0 : index
    %89 = vector.load %arg4[%c2_60, %c0_61, %c0_62] : memref<3x4x4xf32, #tpu.memory_space<vmem>>, vector<1x4x4xf32>
    %90 = vector.shape_cast %89 : vector<1x4x4xf32> to vector<4x4xf32>
    %91 = vector.extract_strided_slice %79 {offsets = [0, 2], sizes = [4, 16], strides = [1, 1]} : vector<4x18xf32> to vector<4x16xf32>
    %cst_63 = arith.constant dense<0.000000e+00> : vector<4x16xf32>
    %92 = tpu.matmul %90, %91, %cst_63 {dimension_numbers = #tpu.dot_dimension_numbers<[1], [0], [0], [1], [0, 0, 1, 1], [], []>} : vector<4x4xf32>, vector<4x16xf32>, vector<4x16xf32> -> vector<4x16xf32>
    %93 = arith.addf %88, %92 : vector<4x16xf32>
    %94 = vector.extract_strided_slice %56 {offsets = [0, 2], sizes = [4, 16], strides = [1, 1]} : vector<4x20xf32> to vector<4x16xf32>
    %c0_64 = arith.constant 0 : index
    %c0_65 = arith.constant 0 : index
    %95 = vector.load %arg5[%c0_64, %c0_65] : memref<4x1xf32, #tpu.memory_space<vmem>>, vector<4x1xf32>
    %96 = vector.broadcast %95 : vector<4x1xf32> to vector<4x16xf32>
    %97 = arith.addf %93, %96 : vector<4x16xf32>
    %98 = arith.addf %97, %94 : vector<4x16xf32>
    %cst_66 = arith.constant 0.000000e+00 : f32
    %99 = vector.broadcast %cst_66 : f32 to vector<4x16xf32>
    %100 = arith.maximumf %98, %99 : vector<4x16xf32>
    %c1_67 = arith.constant 1 : index
    %c0_68 = arith.constant 0 : index
    %c0_69 = arith.constant 0 : index
    %101 = vector.load %arg6[%c1_67, %c0_68, %c0_69] : memref<2x4x16xf32, #tpu.memory_space<vmem>>, vector<1x4x16xf32>
    %102 = vector.shape_cast %101 : vector<1x4x16xf32> to vector<4x16xf32>
    %103 = vector.shape_cast %100 : vector<4x16xf32> to vector<1x4x16xf32>
    tpu.vector_store %arg6[%c1_67, %c0_68, %c0_69], %103 {strides = array<i32>} : memref<2x4x16xf32, #tpu.memory_space<vmem>>, vector<1x4x16xf32>,
    return
  }
  func.func @transform_0(%arg0: i32) -> (i32, i32, i32) {
    %c0_i32 = arith.constant 0 : i32
    %c0_i32_0 = arith.constant 0 : i32
    %c0_i32_1 = arith.constant 0 : i32
    return %arg0, %c0_i32, %c0_i32_0 : i32, i32, i32
  }
  func.func @transform_1(%arg0: i32) -> (i32, i32, i32) {
    %c0_i32 = arith.constant 0 : i32
    %c0_i32_0 = arith.constant 0 : i32
    %c0_i32_1 = arith.constant 0 : i32
    %c0_i32_2 = arith.constant 0 : i32
    return %c0_i32, %c0_i32_0, %c0_i32_1 : i32, i32, i32
  }
  func.func @transform_2(%arg0: i32) -> (i32, i32) {
    %c0_i32 = arith.constant 0 : i32
    %c0_i32_0 = arith.constant 0 : i32
    %c0_i32_1 = arith.constant 0 : i32
    return %c0_i32, %c0_i32_0 : i32, i32
  }
  func.func @transform_3(%arg0: i32) -> (i32, i32, i32) {
    %c0_i32 = arith.constant 0 : i32
    %c0_i32_0 = arith.constant 0 : i32
    %c0_i32_1 = arith.constant 0 : i32
    %c0_i32_2 = arith.constant 0 : i32
    return %c0_i32, %c0_i32_0, %c0_i32_1 : i32, i32, i32
  }
  func.func @transform_4(%arg0: i32) -> (i32, i32) {
    %c0_i32 = arith.constant 0 : i32
    %c0_i32_0 = arith.constant 0 : i32
    %c0_i32_1 = arith.constant 0 : i32
    return %c0_i32, %c0_i32_0 : i32, i32
  }
  func.func @transform_5(%arg0: i32) -> (i32, i32, i32) {
    %c0_i32 = arith.constant 0 : i32
    %c0_i32_0 = arith.constant 0 : i32
    %c0_i32_1 = arith.constant 0 : i32
    return %arg0, %c0_i32, %c0_i32_0 : i32, i32, i32
  }
}

</mosaic_0001>

<bundles_post_ra>
// kernel: tpu_custom_call.1
= control target key start
LH: loop header
LB: loop body
LE: loop exit
PB: predicated region body
PF: predicated region fallthrough
CT: control target
= control target key end

     0   :  { %10 = vsyncpa [#allocation3], 0  ;;  %s1322_s0 = inlined_call_operand.hbm [shape: f32[4,4,20], index: 0, kind: input, shape index: {}]   ;;  %s1323_s1 = inlined_call_operand.hbm [shape: f32[3,4,4], index: 1, kind: input, shape index: {}]   ;;  %s1324_s2 = inlined_call_operand.vmem [shape: f32[4,1], index: 2, kind: input, shape index: {}]   ;;  %s1325_s3 = inlined_call_operand.hbm [shape: f32[3,4,4], index: 3, kind: input, shape index: {}]   ;;  %s1326_s4 = inlined_call_operand.vmem [shape: f32[4,1], index: 4, kind: input, shape index: {}]   ;;  %s1327_s5 = inlined_call_operand.hbm [shape: f32[4,4,16], index: 5, kind: output, shape index: {}]  }
   0x1   :  { %12 = vsyncpa [#allocation3 + $0x1], 0 }
   0x2   :  { %13 = vsyncpa [#allocation6], 0 }
   0x3   :  { %14 = vsyncpa [#allocation4], 0 }
   0x4   :  { %16 = vsyncpa [#allocation4 + $0x1], 0  ;;  %s1106_s18 = smov 0   ;;  %s1108_s19 = smov 0  }
   0x5   :  { %s1110_s20 = smov 0   ;;  %s1112_s21 = smov 0  }
   0x6 LB: > { %s1127_s22 = sadd.s32 4294967295, %s1065_s21   ;;  %s782_s23 = sadd.s32 4294967294, %s1065_s21   ;;  %s1065_s21 = sphi %s1112_s21, %s1341_s21   ;;  %s1061_s20 = sphi %s1110_s20, %s1340_s20   ;;  %s1057_s19 = sphi %s1108_s19, %s1339_s19   ;;  %s1053_s18 = sphi %s1106_s18, %s1338_s18  }
   0x7   : > { %p42_p0 = scmp.ne.s32.totalorder %s1057_s19, %s1053_s18  ;;  %p43_p1 = scmp.eq.s32.totalorder %s1127_s22, 0 }
   0x8   : > { %p150_p2 = scmp.eq.s32.totalorder %s1127_s22, 1  ;;  %p156_p3 = scmp.eq.s32.totalorder %s782_s23, 1 }
   0x9   : > { %p1136_p4 = por %p43_p1, %p42_p0  ;;  %p783_p5 = scmp.ge.s32.totalorder %s1065_s21, 1 }
   0xa   : > { %p1141_p6 = por %p156_p3, %p42_p0  ;;  %p163_p7 = scmp.lt.s32.totalorder %s1065_s21, 3 }
   0xb   : > { %s174_s28 = sshll.u32 %s1323_s1, 4  ;;  %s1067_s30 = smov [#allocation5]   ;;  %s175_s28 = int_to_ptr.hbm [resolvable:$true] %s174_s28 }
   0xc   : > { %p1149_p8 = pnand %p783_p5, %p163_p7  ;;  %s176_s6 = sshll.u32 %s1067_s30, 4  ;;  %s177_s6 = int_to_ptr.vmem [resolvable:$true] %s176_s6 }
   0xd   : > { %s191_s9 = sshll.u32 %s1325_s3, 4  ;;  %s1328_s10 = smov 64   ;;  %s192_s9 = int_to_ptr.hbm [resolvable:$true] %s191_s9 }
   0xe   : > { %p840_p9 = pneg %p1149_p8  ;;  %s1069_s11 = smov 4  }
   0xf   : > { %s1070_s12 = smov [#allocation7]   ;;  %s1168_s14 = sadd.s32 1, %s1065_s21  }
  0x10   : > { %p841_p10 = pnand %p840_p9, %p43_p1  ;;  %s193_s13 = sshll.u32 %s1070_s12, 4  ;;  %s194_s13 = int_to_ptr.vmem [resolvable:$true] %s193_s13 }
  0x11   : > { %s29_s15 = sadd.s32 1, %s1061_s20  ;;  %s26_s16 = ssub.s32 %s1065_s21, %s1168_s14 }
  0x12   : > { %843 = dma.hbm_to_vmem [thread:$0]  (!%p841_p10), %s175_s28, 192, %s177_s6, [#allocation6], %s1328_s10, %s1328_s10, %s1069_s11  }
  0x13   : > { %846 = dma.hbm_to_vmem [thread:$0]  (!%p841_p10), %s192_s9, 192, %s194_s13, [#allocation6], %s1328_s10, %s1328_s10, %s1069_s11  }
  0x14   : > { %p36_p12 = scmp.ne.s32.totalorder %s1061_s20, %s1057_s19  ;;  %p27_p13 = scmp.eq.s32.totalorder %s26_s16, 0 }
  0x15   : > { %p37_p0 = scmp.eq.s32.totalorder %s1065_s21, 0  ;;  %p857_p5 = scmp.lt.s32.totalorder %s1065_s21, 2 }
  0x16   : > { %p1178_p3 = por %p150_p2, %p36_p12  ;;  %s210_s26 = sand.u32 1, %s1061_s20  }
  0x17   : > { %s1184_s23 = scalar_select %p27_p13, %s1061_s20, %s29_s15  }
  0x18   : > { %p38_p7 = por %p37_p0, %p36_p12  ;;  %s787_s27 = sshll.u32 %s210_s26, 3 }
  0x19   : > { %s826_s28 = sshll.u32 %s1065_s21, 3  ;;  %s214_s8 = scalar_lea.vmem [#allocation2], %s787_s27 }
  0x1a   : > { %s219_s7 = scalar_lea.hbm %s1322_s0, %s826_s28  ;;  %s222_s9 = sshll.u32 %s214_s8, 4  ;;  %s223_s9 = int_to_ptr.vmem [resolvable:$true] %s222_s9 }
  0x1b   : > { %s220_s12 = sshll.u32 %s219_s7, 4  ;;  %p1191_p2 = pnand %p857_p5, %p38_p7  ;;  %s221_s12 = int_to_ptr.hbm [resolvable:$true] %s220_s12 }
  0x1c   : > { %s211_s15 = scalar_lea.sflag [#allocation3], %s210_s26  ;;  %s965_s16 = sshra.s32 %s221_s12, 4  ;;  %s966_s16 = int_to_ptr.hbm [resolvable:$true] %s965_s16 }
  0x1d   : > { %s967_s10 = scalar_lea.hbm %s966_s16, 8  ;;  %p969_p10 = pneg %p1191_p2 }
  0x1e   : > { %p968_p9 = scmp.ne.s32.totalorder %s966_s16, %s967_s10  ;;  %s972_s30 = scalar_lea.hbm %s1322_s0, 16 }
  0x1f   : > { %p973_p0 = scmp.lt.s32.totalorder %s966_s16, %s1322_s0  ;;  %p974_p5 = scmp.lt.s32.totalorder %s972_s30, %s967_s10 }
  0x20   : > { %p970_p12 = pnand %p969_p10, %p968_p9 }
  0x21   : > { %p975_p7 = por %p974_p5, %p973_p0 }
  0x22   : > { %p971_p13 = pneg %p970_p12 }
  0x24   : > { %p976_p11 = pnand %p975_p7, %p971_p13 }
  0x26   : > { %979 = shalt.err (!%p976_p11)
}
  0x27   : > { %s1334_s26 = smov 64   ;;  %234 = sbr.rel (%p1149_p8) target bundleno = 828 (0x33c), region = 40 }
  0x28   : > { %850 = dma.hbm_to_vmem [thread:$0]  (!%p1191_p2), %s221_s12, 128, %s223_s9, %s211_s15, %s1334_s26, %s1334_s26, %s1069_s11  }
  0x29   : > { %s1211_s8 = sand.u32 (!%p1149_p8), 1, %s1057_s19  }
  0x2a   : > { %s791_s10 = sshll.u32 (!%p1149_p8), %s1211_s8, 3  ;;  %s237_s16 = scalar_lea.sflag (!%p1149_p8), [#allocation3], %s1211_s8 }
  0x2b   : > { %s240_s28 = scalar_lea.vmem (!%p1149_p8), [#allocation2], %s791_s10 }
  0x2c   : > { %1040 = dma.done.wait (%p1136_p4), %s237_s16, 128  }
  0x2d   : > { %1042 = vsyncadd (%p1136_p4), %s237_s16, 4294967168 }
  0x2e   : > { %1044 = dma.done.wait (%p43_p1), [#allocation6], 384  }
  0x2f   : > { %1046 = vsyncadd (%p43_p1), [#allocation6], 4294966912  ;;  %v285_v0 = vld [vmem:[%s240_s28] sm:$0xf]  ;;  %s1071_s29 = smov 126   ;;  %s1072_s11 = smov 127   ;;  %v280_v9 = vlaneseq }
  0x30   : > { %346 = vrot.lane.b32.xlu0 %v285_v0, %s1071_s29  ;;  %vm296_vm0 = vcmask 1043456   ;;  %vm292_vm1 = vcmask 31744   ;;  %v286_v1 = vld [vmem:[#allocation5] sm:$0xf]  ;;  %v374_v2 = vld [vmem:[%s1324_s2] sm:$0xf] }
  0x31   : > { %797 = vmatpush.msk.msra.mxu1 %vm296_vm0, %v285_v0  ;;  %v1073_v3 = vmov 0   ;;  %v345_v4 = vld [vmem:[#allocation5 + $0x8] sm:$0xf]  ;;  %v288_v6 = vld [vmem:[#allocation5 + $0x4] sm:$0xf]  ;;  %v281_v11 = vand.u32 127, %v280_v9 }
  0x32   : > { %798 = vmatmul.msk.f32.vlgmr.msra.gmra.mxu1 %vm292_vm1, %v286_v1  ;;  %902 = vset.pattern.permute.xlu1 %v1073_v3  ;;  %v807_v8 = vld [vmem:[%s240_s28 + $0x4] sm:$0xf]  ;;  %v385_v22 = vld [vmem:[#allocation7] sm:$0xf]  ;;  %v486_v23 = vld [vmem:[#allocation5 + $0x4] sm:$0xf] }
  0x33   : > { %903 = vset.pattern.permute.xlu0 %v1073_v3  ;;  %377 = vperm.xlu1 %902, %v374_v2   ;;  %vm282_vm2 = vcmp.ge.s32.totalorder %v281_v11, 1  ;;  %vm283_vm3 = vcmp.lt.s32.totalorder %v281_v11, 17  ;;  %v569_v25 = vld [vmem:[%s1324_s2] sm:$0xf]  ;;  %v540_v26 = vld [vmem:[#allocation5 + $0x8] sm:$0xf] }
  0x34   : > { %904 = vset.pattern.permute.xlu2 %v1073_v3  ;;  %vm1241_vm4 = vmand %vm282_vm2, %vm283_vm3  ;;  %v662_v27 = vld [vmem:[%s1326_s4] sm:$0xf]  ;;  %v442_v30 = vld [vmem:[#allocation7 + $0x8] sm:$0xf]  ;;  %vm481_vm5 = vcmask 125952   ;;  %s277_s7 = scalar_lea.vmem [#allocation8], %s791_s10 }
  0x35   : > { %488 = vrot.lane.b32.xlu2 %v807_v8, %s1072_s11  ;;  %v387_v28 = vld [vmem:[#allocation7 + $0x4] sm:$0xf]  ;;  %v485_v31 = vld [vmem:[#allocation5] sm:$0xf]  ;;  %v578_v46 = vld [vmem:[#allocation7] sm:$0xf] }
  0x36   : > { %v471_v45 = vld [vmem:[%s1326_s4] sm:$0xf]  ;;  %v633_v47 = vld [vmem:[#allocation7 + $0x8] sm:$0xf]  ;;  %s827_s26 = sshll.u32 %s1127_s22, 3  ;;  %s687_s10 = sshll.u32 %s277_s7, 4  ;;  %s688_s10 = int_to_ptr.vmem [resolvable:$true] %s687_s10 }
  0x37   : > { %v579_v55 = vld [vmem:[#allocation7 + $0x4] sm:$0xf]  ;;  %s675_s22 = scalar_lea.sflag [#allocation4], %s1211_s8  ;;  %s1015_s15 = scalar_lea.hbm %s1327_s5, 16 }
  0x38   : > { %290 = vrot.lane.b32.xlu0 %v285_v0, %s1072_s11 }
  0x3d   : > { %541 = vrot.lane.b32.xlu2 %v807_v8, %s1071_s29 }
  0x40   : > { %572 = vperm.xlu0 %903, %v569_v25  }
  0x48   : > { %665 = vperm.xlu0 %903, %v662_v27  }
  0x8f   : > { %v489_v21 = vpop.permute.xlu2 %488 }
  0x97   : > { %v1253_v24 = vpop.permute.xlu2 %541 }
  0xa2   : > { %v1232_v5 = vpop.permute.xlu0 %346 }
  0xa3   : > { %799 = vmatpush.msk.msra.mxu2 %vm296_vm0, %v1232_v5 }
  0xa4   : > { %800 = vmatmul.msk.f32.vlgmr.msra.gmra.mxu2 %vm292_vm1, %v345_v4 }
  0xa5   : > { %v378_v15 = vpop.permute.xlu1 %377  ;;  %808 = vmatpush.msk.msrb.mxu2 %vm296_vm0, %v489_v21 }
  0xaa   : > { %v291_v7 = vpop.permute.xlu0 %290 }
  0xab   : > { %795 = vmatpush.msk.msra.mxu0 %vm296_vm0, %v291_v7 }
  0xac   : > { %796 = vmatmul.msk.f32.vlgmr.msra.gmra.mxu0 %vm292_vm1, %v288_v6  ;;  %809 = vmatmul.msk.f32.vlgmr.msrb.gmra.mxu2 %vm292_vm1, %v486_v23 }
  0xaf   : > { %v341_v10 = vpop.f32.mrf.mxu1 }
  0xb2   : > { %v573_v41 = vpop.permute.xlu0 %572 }
  0xba   : > { %v666_v62 = vpop.permute.xlu0 %665 }
 0x127   : > { %v370_v13 = vpop.f32.mrf.mxu2 }
 0x129   : > { %v316_v12 = vpop.f32.mrf.mxu0 }
 0x12a   : > { %v342_v14 = vadd.f32 %v341_v10, %v316_v12 }
 0x12c   : > { %v373_v16 = vadd.f32 %v370_v13, %v342_v14 }
 0x12e   : > { %v380_v17 = vadd.f32 %v378_v15, %v373_v16 }
 0x12f   : > { %v512_v36 = vpop.f32.mrf.mxu2 }
 0x130   : > { %v381_v19 = vmax.f32 %v380_v17, 0.0 }
 0x132   : > { %v384_v20 = vsel %vm1241_vm4, %v381_v19, 0.0 }
 0x133   : > { %389 = vrot.lane.b32.xlu1 %v384_v20, %s1072_s11  ;;  %803 = vmatpush.msk.msrb.mxu0 %vm296_vm0, %v384_v20 }
 0x134   : > { %804 = vmatmul.msk.f32.vlgmr.msrb.gmra.mxu0 %vm292_vm1, %v385_v22 }
 0x135   : > { %812 = vmatpush.msk.msra.mxu0 %vm296_vm0, %v1253_v24 }
 0x13b   : > { %443 = vrot.lane.b32.xlu1 %v384_v20, %s1071_s29 }
 0x13c   : > { %813 = vmatmul.msk.f32.vlgmr.msra.gmra.mxu0 %vm292_vm1, %v540_v26 }
 0x1a5   : > { %v390_v29 = vpop.permute.xlu1 %389 }
 0x1a6   : > { %801 = vmatpush.msk.msra.mxu3 %vm296_vm0, %v390_v29 }
 0x1a7   : > { %802 = vmatmul.msk.f32.vlgmr.msra.gmra.mxu3 %vm292_vm1, %v387_v28 }
 0x1a8   : > { %810 = vmatpush.msk.msrb.mxu3 %vm296_vm0, %v807_v8 }
 0x1ad   : > { %v444_v32 = vpop.permute.xlu1 %443 }
 0x1ae   : > { %805 = vmatpush.msk.msrb.mxu1 %vm296_vm0, %v444_v32 }
 0x1af   : > { %806 = vmatmul.msk.f32.vlgmr.msrb.gmra.mxu1 %vm292_vm1, %v442_v30  ;;  %811 = vmatmul.msk.f32.vlgmr.msrb.gmra.mxu3 %vm292_vm1, %v485_v31 }
 0x1b1   : > { %v438_v33 = vpop.f32.mrf.mxu0 }
 0x1b9   : > { %v565_v38 = vpop.f32.mrf.mxu0 }
 0x22a   : > { %v413_v34 = vpop.f32.mrf.mxu3 }
 0x22b   : > { %v439_v35 = vadd.f32 %v438_v33, %v413_v34 }
 0x22c   : > { %v467_v49 = vpop.f32.mrf.mxu1 }
 0x22d   : > { %v470_v50 = vadd.f32 %v467_v49, %v439_v35 }
 0x232   : > { %v537_v37 = vpop.f32.mrf.mxu3 }
 0x233   : > { %v538_v39 = vadd.f32 %v537_v37, %v512_v36 }
 0x235   : > { %v568_v40 = vadd.f32 %v565_v38, %v538_v39 }
 0x237   : > { %v575_v42 = vadd.f32 %v573_v41, %v568_v40 }
 0x239   : > { %v576_v43 = vmax.f32 %v575_v42, 0.0 }
 0x23b   : > { %v577_v44 = vsel %vm1241_vm4, %v576_v43, 0.0 }
 0x23c   : > { %581 = vrot.lane.b32.xlu1 %v577_v44, %s1072_s11  ;;  %634 = vrot.lane.b32.xlu2 %v577_v44, %s1071_s29  ;;  %s686_s29 = scalar_lea.hbm %s1327_s5, %s827_s26 }
 0x23d   : > { %816 = vmatpush.msk.msra.mxu2 %vm296_vm0, %v577_v44  ;;  %s689_s11 = sshll.u32 %s686_s29, 4  ;;  %s690_s11 = int_to_ptr.hbm [resolvable:$true] %s689_s11 }
 0x23e   : > { %817 = vmatmul.msk.f32.vlgmr.msra.gmra.mxu2 %vm292_vm1, %v578_v46  ;;  %s1009_s24 = sshra.s32 %s690_s11, 4  ;;  %s1010_s24 = int_to_ptr.hbm [resolvable:$true] %s1009_s24 }
 0x23f   : > { %s1011_s9 = scalar_lea.hbm %s1010_s24, 8  ;;  %p1016_p11 = scmp.lt.s32.totalorder %s1010_s24, %s1327_s5 }
 0x240   : > { %p1012_p1 = scmp.ne.s32.totalorder %s1010_s24, %s1011_s9  ;;  %p1017_p2 = scmp.lt.s32.totalorder %s1015_s15, %s1011_s9 }
 0x242   : > { %p1013_p4 = pnand %p1012_p1, %p1178_p3  ;;  %p1018_p9 = por %p1017_p2, %p1016_p11 }
 0x244   : > { %474 = vperm.xlu2 %904, %v471_v45   ;;  %p1014_p8 = pneg %p1013_p4 }
 0x246   : > { %p1019_p10 = pnand %p1018_p9, %p1014_p8 }
 0x296   : > { %v635_v48 = vpop.permute.xlu2 %634 }
 0x297   : > { %818 = vmatpush.msk.msra.mxu3 %vm296_vm0, %v635_v48 }
 0x298   : > { %819 = vmatmul.msk.f32.vlgmr.msra.gmra.mxu3 %vm292_vm1, %v633_v47 }
 0x29e   : > { %v475_v51 = vpop.permute.xlu2 %474 }
 0x29f   : > { %v477_v52 = vadd.f32 %v475_v51, %v470_v50 }
 0x2a1   : > { %v479_v53 = vadd.f32 %v477_v52, %v1232_v5 }
 0x2a3   : > { %v480_v54 = vmax.f32 %v479_v53, 0.0 }
 0x2a5   : > { %482 = vst.msk [vmem:[%s277_s7] sm:$0xf] %vm481_vm5, %v480_v54 }
 0x2ae   : > { %v582_v56 = vpop.permute.xlu1 %581 }
 0x2af   : > { %814 = vmatpush.msk.msra.mxu1 %vm296_vm0, %v582_v56 }
 0x2b0   : > { %815 = vmatmul.msk.f32.vlgmr.msra.gmra.mxu1 %vm292_vm1, %v579_v55 }
 0x2c1   : > { %v630_v57 = vpop.f32.mrf.mxu2 }
 0x31b   : > { %v658_v59 = vpop.f32.mrf.mxu3 }
 0x32d   : > { %v605_v58 = vpop.f32.mrf.mxu1 }
 0x32e   : > { %v631_v60 = vadd.f32 %v630_v57, %v605_v58 }
 0x330   : > { %v661_v61 = vadd.f32 %v658_v59, %v631_v60 }
 0x332   : > { %v668_v63 = vadd.f32 %v666_v62, %v661_v61 }
 0x334   : > { %v670_v0 = vadd.f32 %v668_v63, %v1253_v24 }
 0x336   : > { %v671_v1 = vmax.f32 %v670_v0, 0.0 }
 0x338   : > { %820 = vst.msk [vmem:[%s277_s7 + $0x4] sm:$0xf] %vm481_vm5, %v671_v1 }
 0x339   : > { %1022 = shalt.err (!%p1019_p10)
}
 0x33a   : > { %s1074_s8 = smov 64   ;;  %s1075_s6 = smov 4  }
 0x33b   : > { %838 = dma.vmem_to_hbm [thread:$0]  (%p1178_p3), %s688_s10, 128, %s690_s11, %s675_s22, %s1074_s8, %s1074_s8, %s1075_s6  }
 0x33c PF: > { %s704_s7 = sand.u32 1, %s1053_s18   ;;  %p1337_p12 = scmp.ge.s32.totalorder %s1065_s21, 2 }
 0x33d   : > { %s705_s26 = scalar_lea.sflag [#allocation4], %s704_s7 }
 0x33e   : > { %p852_p13 = pnand %p1337_p12, %p1141_p6 }
 0x340   : > { %p853_p0 = pneg %p852_p13 }
 0x342   : > { %1048 = dma.done.wait (%p853_p0), %s705_s26, 128  }
 0x343   : > { %1050 = vsyncadd (%p853_p0), %s705_s26, 4294967168  ;;  %p19_p5 = scmp.ge.s32.totalorder %s1168_s14, 4   ;;  %s1338_s18 = smov %s1057_s19 }
 0x344   : > { %s1339_s19 = smov %s1061_s20  ;;  %s1340_s20 = smov %s1184_s23 }
 0x345   : > { %s1341_s21 = smov %s1168_s14  ;;  %21 = sbr.rel (!%p19_p5) target bundleno = 6 (0x6), region = 99 }
 0x34a   :  { %711 = vsyncpa [#allocation3], 1 }
 0x34b   :  { %713 = vsyncpa [#allocation3 + $0x1], 1 }
 0x34c   :  { %714 = vsyncpa [#allocation6], 1 }
 0x34d   :  { %715 = vsyncpa [#allocation4], 1 }
 0x34e   :  { %717 = vsyncpa [#allocation4 + $0x1], 1 }

</bundles_post_ra>
